<compile_context>
chip_gen: v5e
topology: v5e:2x2
jax: 0.10.0
libtpu: 0.0.40
codegen_flags: <defaults>
</compile_context>

<pallas_src>
import math

import jax
import jax.numpy as jnp
import numpy as np
from jax.experimental import pallas as pl
from jax.experimental.pallas import tpu as pltpu


def _round_up(n, m):
    return ((n + m - 1) // m) * m


def _grid_cell_kernel(fx_ref, fy_ref, ph_ref, pos_ref, out_ref):
    # fx/fy/ph: (3,) f32 in SMEM; pos_ref: (2, TB) VMEM; out_ref: (3, TB) VMEM.
    x = pos_ref[0:1, :]  # (1, TB)
    y = pos_ref[1:2, :]  # (1, TB)
    # Static unroll over the 3 grid-cell frequencies; scalar*vector on the VPU,
    # cos on the EUP, full-lane stores.
    for k in range(3):
        out_ref[k : k + 1, :] = jnp.cos(fx_ref[k] * x + fy_ref[k] * y + ph_ref[k])


def grid_cell_module(pos, freq_x, freq_y, phases, max_tile_b=64 * 1024):
    """Pallas forward pass. pos: (B, 2) f32; params: (3,) f32. Returns (B, 3).

    Note: for genuinely tiny batches the plain jnp expression (see
    grid_cell_reference) is cheaper than a pallas_call launch; the kernel path
    is kept unconditional here so it is exercised by the test.
    """
    B = pos.shape[0]
    dtype = pos.dtype

    # Lane-dense layout: batch on the 128-lane axis.
    pos_t = pos.T  # (2, B)

    # Tile over B (multiple of 128 lanes); pad the last tile in the wrapper so
    # no out-of-bounds VMEM access can happen on the last grid step.
    tile_b = min(max_tile_b, _round_up(B, 128))
    b_padded = _round_up(B, tile_b)
    if b_padded != B:
        pos_t = jnp.pad(pos_t, ((0, 0), (0, b_padded - B)))
    num_tiles = b_padded // tile_b

    out_t = pl.pallas_call(
        _grid_cell_kernel,
        out_shape=jax.ShapeDtypeStruct((3, b_padded), dtype),
        grid=(num_tiles,),
        in_specs=[
            pl.BlockSpec(memory_space=pltpu.MemorySpace.SMEM),  # freq_x (3,)
            pl.BlockSpec(memory_space=pltpu.MemorySpace.SMEM),  # freq_y (3,)
            pl.BlockSpec(memory_space=pltpu.MemorySpace.SMEM),  # phases (3,)
            pl.BlockSpec((2, tile_b), lambda i: (0, i)),         # pos (2, B)
        ],
        out_specs=pl.BlockSpec((3, tile_b), lambda i: (0, i)),
        compiler_params=pltpu.CompilerParams(
            dimension_semantics=("parallel",),
        ),
    )(freq_x, freq_y, phases, pos_t)

    # Strip padding, return PyTorch layout (B, 3).
    return out_t[:, :B].T


def grid_cell_reference(pos, freq_x, freq_y, phases):
    """Plain-JAX reference (identical math to the PyTorch forward)."""
    x = pos[:, 0:1]
    y = pos[:, 1:2]
    return jnp.cos(x * freq_x[None, :] + y * freq_y[None, :] + phases[None, :])


def make_params(scale, dtype=jnp.float32):
    """Deterministic parameter init matching the PyTorch __init__."""
    angles = np.array([0.0, np.pi / 3.0, 2.0 * np.pi / 3.0], dtype=np.float32)
    freq_x = jnp.asarray(np.cos(angles) * scale, dtype=dtype)
    freq_y = jnp.asarray(np.sin(angles) * scale, dtype=dtype)
    phases = jnp.zeros((3,), dtype=dtype)
    return freq_x, freq_y, phases


if __name__ == "__main__":
    key = jax.random.PRNGKey(0)
    batch = 8
    scale = 1.5

    pos = jax.random.normal(key, (batch, 2), dtype=jnp.float32)
    freq_x, freq_y, phases = make_params(scale)

    out = grid_cell_module(pos, freq_x, freq_y, phases)
    out = jax.block_until_ready(out)

    ref = grid_cell_reference(pos, freq_x, freq_y, phases)
    np.testing.assert_allclose(np.asarray(out), np.asarray(ref), rtol=1e-5, atol=1e-5)

    print("KERNEL_OK")
</pallas_src>

<mosaic_0001>
module attributes {stable_mosaic.version = 11 : i64} {
  func.func @_grid_cell_kernel(%arg0: i32, %arg1: memref<3xf32, #tpu.memory_space<smem>>, %arg2: memref<3xf32, #tpu.memory_space<smem>>, %arg3: memref<3xf32, #tpu.memory_space<smem>>, %arg4: memref<2x128xf32, #tpu.memory_space<vmem>>, %arg5: memref<3x128xf32, #tpu.memory_space<vmem>>) attributes {dimension_semantics = [#tpu.dimension_semantics<parallel>], iteration_bounds = array<i64: 1>, scalar_prefetch = 0 : i64, scratch_operands = 0 : i64, tpu.core_type = #tpu.core_type<tc>, window_params = [{transform_indices = @transform_0, window_bounds = array<i64: 3>}, {transform_indices = @transform_1, window_bounds = array<i64: 3>}, {transform_indices = @transform_2, window_bounds = array<i64: 3>}, {transform_indices = @transform_3, window_bounds = array<i64: 2, 128>}, {transform_indices = @transform_4, window_bounds = array<i64: 3, 128>}]} {
    %c0 = arith.constant 0 : index
    %c0_0 = arith.constant 0 : index
    %0 = vector.load %arg4[%c0, %c0_0] : memref<2x128xf32, #tpu.memory_space<vmem>>, vector<1x128xf32>
    %c1 = arith.constant 1 : index
    %c0_1 = arith.constant 0 : index
    %1 = vector.load %arg4[%c1, %c0_1] : memref<2x128xf32, #tpu.memory_space<vmem>>, vector<1x128xf32>
    %c0_2 = arith.constant 0 : index
    %2 = memref.load %arg1[%c0_2] : memref<3xf32, #tpu.memory_space<smem>>
    %3 = vector.broadcast %2 : f32 to vector<1x128xf32>
    %4 = arith.mulf %3, %0 : vector<1x128xf32>
    %c0_3 = arith.constant 0 : index
    %5 = memref.load %arg2[%c0_3] : memref<3xf32, #tpu.memory_space<smem>>
    %6 = vector.broadcast %5 : f32 to vector<1x128xf32>
    %7 = arith.mulf %6, %1 : vector<1x128xf32>
    %8 = arith.addf %4, %7 : vector<1x128xf32>
    %c0_4 = arith.constant 0 : index
    %9 = memref.load %arg3[%c0_4] : memref<3xf32, #tpu.memory_space<smem>>
    %10 = vector.broadcast %9 : f32 to vector<1x128xf32>
    %11 = arith.addf %8, %10 : vector<1x128xf32>
    %12 = math.cos %11 : vector<1x128xf32>
    %c0_5 = arith.constant 0 : index
    %c0_6 = arith.constant 0 : index
    %13 = vector.load %arg5[%c0_5, %c0_6] : memref<3x128xf32, #tpu.memory_space<vmem>>, vector<1x128xf32>
    tpu.vector_store %arg5[%c0_5, %c0_6], %12 {strides = array<i32>} : memref<3x128xf32, #tpu.memory_space<vmem>>, vector<1x128xf32>,
    %c1_7 = arith.constant 1 : index
    %14 = memref.load %arg1[%c1_7] : memref<3xf32, #tpu.memory_space<smem>>
    %15 = vector.broadcast %14 : f32 to vector<1x128xf32>
    %16 = arith.mulf %15, %0 : vector<1x128xf32>
    %c1_8 = arith.constant 1 : index
    %17 = memref.load %arg2[%c1_8] : memref<3xf32, #tpu.memory_space<smem>>
    %18 = vector.broadcast %17 : f32 to vector<1x128xf32>
    %19 = arith.mulf %18, %1 : vector<1x128xf32>
    %20 = arith.addf %16, %19 : vector<1x128xf32>
    %c1_9 = arith.constant 1 : index
    %21 = memref.load %arg3[%c1_9] : memref<3xf32, #tpu.memory_space<smem>>
    %22 = vector.broadcast %21 : f32 to vector<1x128xf32>
    %23 = arith.addf %20, %22 : vector<1x128xf32>
    %24 = math.cos %23 : vector<1x128xf32>
    %c1_10 = arith.constant 1 : index
    %c0_11 = arith.constant 0 : index
    %25 = vector.load %arg5[%c1_10, %c0_11] : memref<3x128xf32, #tpu.memory_space<vmem>>, vector<1x128xf32>
    tpu.vector_store %arg5[%c1_10, %c0_11], %24 {strides = array<i32>} : memref<3x128xf32, #tpu.memory_space<vmem>>, vector<1x128xf32>,
    %c2 = arith.constant 2 : index
    %26 = memref.load %arg1[%c2] : memref<3xf32, #tpu.memory_space<smem>>
    %27 = vector.broadcast %26 : f32 to vector<1x128xf32>
    %28 = arith.mulf %27, %0 : vector<1x128xf32>
    %c2_12 = arith.constant 2 : index
    %29 = memref.load %arg2[%c2_12] : memref<3xf32, #tpu.memory_space<smem>>
    %30 = vector.broadcast %29 : f32 to vector<1x128xf32>
    %31 = arith.mulf %30, %1 : vector<1x128xf32>
    %32 = arith.addf %28, %31 : vector<1x128xf32>
    %c2_13 = arith.constant 2 : index
    %33 = memref.load %arg3[%c2_13] : memref<3xf32, #tpu.memory_space<smem>>
    %34 = vector.broadcast %33 : f32 to vector<1x128xf32>
    %35 = arith.addf %32, %34 : vector<1x128xf32>
    %36 = math.cos %35 : vector<1x128xf32>
    %c2_14 = arith.constant 2 : index
    %c0_15 = arith.constant 0 : index
    %37 = vector.load %arg5[%c2_14, %c0_15] : memref<3x128xf32, #tpu.memory_space<vmem>>, vector<1x128xf32>
    tpu.vector_store %arg5[%c2_14, %c0_15], %36 {strides = array<i32>} : memref<3x128xf32, #tpu.memory_space<vmem>>, vector<1x128xf32>,
    return
  }
  func.func @transform_0(%arg0: i32) -> i32 {
    %c0_i32 = arith.constant 0 : i32
    %c0_i32_0 = arith.constant 0 : i32
    return %c0_i32 : i32
  }
  func.func @transform_1(%arg0: i32) -> i32 {
    %c0_i32 = arith.constant 0 : i32
    %c0_i32_0 = arith.constant 0 : i32
    return %c0_i32 : i32
  }
  func.func @transform_2(%arg0: i32) -> i32 {
    %c0_i32 = arith.constant 0 : i32
    %c0_i32_0 = arith.constant 0 : i32
    return %c0_i32 : i32
  }
  func.func @transform_3(%arg0: i32) -> (i32, i32) {
    %c0_i32 = arith.constant 0 : i32
    %c0_i32_0 = arith.constant 0 : i32
    return %c0_i32, %arg0 : i32, i32
  }
  func.func @transform_4(%arg0: i32) -> (i32, i32) {
    %c0_i32 = arith.constant 0 : i32
    %c0_i32_0 = arith.constant 0 : i32
    return %c0_i32, %arg0 : i32, i32
  }
}

</mosaic_0001>

<bundles_post_ra>
// kernel: tpu_custom_call.1
= control target key start
LH: loop header
LB: loop body
LE: loop exit
PB: predicated region body
PF: predicated region fallthrough
CT: control target
= control target key end

     0   :  { %9 = vsyncpa [#allocation4], 0  ;;  %s1006_s0 = inlined_call_operand.hbm [shape: f32[3], index: 0, kind: input, shape index: {}]   ;;  %s1007_s1 = inlined_call_operand.hbm [shape: f32[3], index: 1, kind: input, shape index: {}]   ;;  %s1008_s2 = inlined_call_operand.hbm [shape: f32[3], index: 2, kind: input, shape index: {}]   ;;  %s1009_s3 = inlined_call_operand.vmem [shape: f32[2,128], index: 3, kind: input, shape index: {}]   ;;  %s1010_s4 = inlined_call_operand.hbm [shape: f32[3,128], index: 4, kind: output, shape index: {}]  }
   0x1   :  { %10 = vsyncpa [#allocation6], 0  ;;  %s26_s17 = sshll.u32 %s1007_s1, 4  ;;  %s27_s17 = int_to_ptr.hbm [resolvable:$true] %s26_s17 }
   0x2   :  { %11 = vsyncpa [#allocation3], 0  ;;  %s17_s20 = sshll.u32 %s1006_s0, 4  ;;  %s661_s21 = smov [#allocation5]   ;;  %s18_s20 = int_to_ptr.hbm [resolvable:$true] %s17_s20 }
   0x3   :  { %29 = dma.hbm_to_smem %s27_s17, 16, %s661_s21, [#allocation6]  }
   0x4   :  { %s662_s22 = smov [#allocation2]   ;;  %s35_s25 = sshll.u32 %s1008_s2, 4  ;;  %s36_s25 = int_to_ptr.hbm [resolvable:$true] %s35_s25 }
   0x5   :  { %20 = dma.hbm_to_smem %s18_s20, 16, %s662_s22, [#allocation4]  }
   0x6   :  { %s663_s26 = smov [#allocation7]  }
   0x7   :  { %38 = dma.hbm_to_smem %s36_s25, 16, %s663_s26, [#allocation6]  }
   0x8   :  { %655 = dma.done.wait [#allocation4], 16  }
   0x9   :  { %656 = vsyncadd [#allocation4], 4294967280 }
   0xa   :  { %657 = dma.done.wait [#allocation6], 32  }
   0xb   :  { %658 = vsyncadd [#allocation6], 4294967264 }
   0xc   :  { %53 = sfence }
   0xd   :  { %s56_s1 = sld [smem:[#allocation2]]  ;;  %v54_v0 = vld [vmem:[%s1009_s3] sm:$0x1]  ;;  %v55_v1 = vld [vmem:[%s1009_s3 + $0x1] sm:$0x1]  ;;  %s671_s3 = smov [#allocation8]  }
   0xe   :  { %s59_s27 = sld [smem:[#allocation5]]  ;;  %v664_v44 = vmov 683565275   ;;  %v665_v46 = vmov 2475754826   ;;  %s556_s11 = sshll.u32 %s671_s3, 4  ;;  %s557_s11 = int_to_ptr.vmem [resolvable:$true] %s556_s11 }
   0xf   :  { %s63_s0 = sld [smem:[#allocation7]]  ;;  %v666_v48 = vmov 2131351028   ;;  %v667_v50 = vmov 2102212464   ;;  %s558_s14 = sshll.u32 %s1010_s4, 4  ;;  %s559_s14 = int_to_ptr.hbm [resolvable:$true] %s558_s14 }
  0x10   :  { %s572_s28 = sld [smem:[#allocation2 + $0x1]]  ;;  %v668_v52 = vmov 920167782   ;;  %v669_v59 = vmov 1326507024  }
  0x11   :  { %s573_s5 = sld [smem:[#allocation5 + $0x1]] }
  0x12   :  { %s574_s2 = sld [smem:[#allocation7 + $0x1]] }
  0x13   :  { %v57_v2 = vstv %s56_s1  ;;  %s578_s8 = sld [smem:[#allocation2 + $0x2]] }
  0x14   :  { %v58_v3 = vmul.f32 %v57_v2, %v54_v0  ;;  %v60_v4 = vstv %s59_s27  ;;  %s579_s9 = sld [smem:[#allocation5 + $0x2]] }
  0x15   :  { %v61_v5 = vmul.f32 %v60_v4, %v55_v1  ;;  %v64_v6 = vstv %s63_s0  ;;  %s580_s10 = sld [smem:[#allocation7 + $0x2]] }
  0x16   :  { %v222_v7 = vstv %s572_s28 }
  0x17   :  { %v62_v8 = vadd.f32 %v61_v5, %v58_v3  ;;  %v223_v9 = vmul.f32 %v222_v7, %v54_v0  ;;  %v225_v10 = vstv %s573_s5 }
  0x18   :  { %v226_v11 = vmul.f32 %v225_v10, %v55_v1  ;;  %v229_v13 = vstv %s574_s2 }
  0x19   :  { %v712_v12 = vadd.f32 %v64_v6, %v62_v8  ;;  %v387_v14 = vstv %s578_s8 }
  0x1a   :  { %v227_v15 = vadd.f32 %v226_v11, %v223_v9  ;;  %v388_v16 = vmul.f32 %v387_v14, %v54_v0  ;;  %v390_v17 = vstv %s579_s9 }
  0x1b   :  { %v66_v18 = vand.u32 2147483647, %v712_v12  ;;  %v69_v19 = vand.u32 2139095040, %v712_v12  ;;  %v391_v20 = vmul.f32 %v390_v17, %v55_v1  ;;  %v394_v29 = vstv %s580_s10 }
  0x1c   :  { %v716_v21 = vadd.f32 %v229_v13, %v227_v15 }
  0x1d   :  { %v70_v22 = vshrl.u32 %v69_v19, 23  ;;  %v73_v23 = vand.u32 8388607, %v66_v18  ;;  %v392_v26 = vadd.f32 %v391_v20, %v388_v16 }
  0x1e   :  { %v231_v24 = vand.u32 2147483647, %v716_v21  ;;  %v234_v25 = vand.u32 2139095040, %v716_v21 }
  0x1f   :  { %v569_v27 = vadd.s32 4294967169, %v70_v22  ;;  %v74_v28 = vor.u32 8388608, %v73_v23  ;;  %v726_v35 = vadd.f32 %v394_v29, %v392_v26 }
  0x20   :  { %v235_v30 = vshrl.u32 %v234_v25, 23  ;;  %v238_v34 = vand.u32 8388607, %v231_v24 }
  0x21   :  { %v76_v31 = vadd.s32 1, %v569_v27  ;;  %v722_v32 = vshll.u32 %v74_v28, 8  ;;  %v399_v42 = vand.u32 2139095040, %v726_v35 }
  0x22   :  { %v575_v33 = vadd.s32 4294967169, %v235_v30  ;;  %v239_v41 = vor.u32 8388608, %v238_v34 }
  0x23   :  { %vm77_vm0 = vcmp.gt.s32.totalorder %v76_v31, 0  ;;  %v729_v40 = vand.u32 65535, %v722_v32  ;;  %v116_v15 = vshrl.u32 %v722_v32, 16 }
  0x24   :  { %v78_v36 = vsel %vm77_vm0, %v76_v31, 0  ;;  %v241_v37 = vadd.s32 1, %v575_v33  ;;  %v752_v16 = vshll.u32 %v239_v41, 8 }
  0x25   :  { %v79_v38 = vshrl.u32 %v78_v36, 5  ;;  %v80_v39 = vand.u32 31, %v78_v36 }
  0x26   :  { %vm242_vm2 = vcmp.gt.s32.totalorder %v241_v37, 0 }
  0x27   :  { %v81_v43 = vsub.s32 32, %v80_v39  ;;  %v83_v45 = vshll.u32 %v664_v44, %v80_v39  ;;  %v86_v47 = vshll.u32 %v665_v46, %v80_v39  ;;  %v89_v49 = vshll.u32 %v666_v48, %v80_v39 }
  0x28   :  { %v92_v51 = vshll.u32 %v667_v50, %v80_v39  ;;  %v95_v53 = vshll.u32 %v668_v52, %v80_v39  ;;  %vm98_vm1 = vcmp.lt.s32.totalorder %v79_v38, 1  ;;  %vm99_vm3 = vcmp.lt.s32.totalorder %v79_v38, 2 }
  0x29   :  { %v82_v54 = vshrl.u32 %v664_v44, %v81_v43  ;;  %v84_v55 = vshrl.u32 %v665_v46, %v81_v43  ;;  %v87_v56 = vshrl.u32 %v666_v48, %v81_v43  ;;  %v90_v57 = vshrl.u32 %v667_v50, %v81_v43 }
  0x2a   :  { %v93_v58 = vshrl.u32 %v668_v52, %v81_v43  ;;  %v96_v60 = vshrl.u32 %v669_v59, %v81_v43  ;;  %vm101_vm4 = vcmp.lt.s32.totalorder %v79_v38, 4  ;;  %v243_v0 = vsel %vm242_vm2, %v241_v37, 0 }
  0x2b   :  { %v85_v61 = vor.u32 %v84_v55, %v83_v45  ;;  %v88_v62 = vor.u32 %v87_v56, %v86_v47  ;;  %v91_v63 = vor.u32 %v90_v57, %v89_v49  ;;  %vm100_vm5 = vcmp.lt.s32.totalorder %v79_v38, 3 }
  0x2c   :  { %v94_v1 = vor.u32 %v93_v58, %v92_v51  ;;  %v97_v2 = vor.u32 %v96_v60, %v95_v53  ;;  %v743_v3 = vand.u32 31, %v243_v0  ;;  %v759_v22 = vshrl.u32 %v243_v0, 5 }
  0x2d   :  { %v102_v4 = vsel %vm98_vm1, %v82_v54, %v85_v61  ;;  %v103_v5 = vsel %vm101_vm4, %v91_v63, 2102212464  ;;  %v106_v6 = vsel %vm98_vm1, %v85_v61, %v88_v62  ;;  %v110_v7 = vsel %vm98_vm1, %v88_v62, %v91_v63 }
  0x2e   :  { %v104_v8 = vsel %vm100_vm5, %v88_v62, %v103_v5  ;;  %v107_v9 = vsel %vm101_vm4, %v94_v1, 920167782  ;;  %v111_v10 = vsel %vm101_vm4, %v97_v2, 1326507024  ;;  %v749_v11 = vsub.s32 32, %v743_v3 }
  0x2f   :  { %v108_v13 = vsel %vm100_vm5, %v91_v63, %v107_v9  ;;  %v112_v14 = vsel %vm100_vm5, %v94_v1, %v111_v10  ;;  %v755_v17 = vsel %vm99_vm3, %v102_v4, %v104_v8  ;;  %v248_v28 = vshll.u32 %v664_v44, %v743_v3 }
  0x30   :  { %v109_v19 = vsel %vm99_vm3, %v106_v6, %v108_v13  ;;  %v113_v20 = vsel %vm99_vm3, %v110_v7, %v112_v14  ;;  %v249_v29 = vshrl.u32 %v665_v46, %v749_v11  ;;  %v251_v30 = vshll.u32 %v665_v46, %v743_v3 }
  0x31   :  { %v117_v23 = vand.u32 65535, %v113_v20  ;;  %v118_v25 = vshrl.u32 %v113_v20, 16  ;;  %v139_v26 = vand.u32 65535, %v109_v19  ;;  %v140_v27 = vshrl.u32 %v109_v19, 16 }
  0x32   :  { %v252_v31 = vshrl.u32 %v666_v48, %v749_v11  ;;  %v254_v37 = vshll.u32 %v666_v48, %v743_v3  ;;  %v250_v60 = vor.u32 %v249_v29, %v248_v28  ;;  %v670_v61 = vmov 0  }
  0x33   :  { %v119_v33 = vmul.u32 %v117_v23, %v729_v40  ;;  %v120_v34 = vmul.u32 %v118_v25, %v729_v40  ;;  %v121_v36 = vmul.u32 %v117_v23, %v116_v15  ;;  %v122_v38 = vmul.u32 %v118_v25, %v116_v15 }
  0x34   :  { %v141_v39 = vmul.u32 %v139_v26, %v729_v40  ;;  %v142_v41 = vmul.u32 %v140_v27, %v729_v40  ;;  %v143_v43 = vmul.u32 %v139_v26, %v116_v15  ;;  %v144_v51 = vmul.u32 %v140_v27, %v116_v15 }
  0x35   :  { %v123_v45 = vshll.u32 %v120_v34, 16  ;;  %v124_v47 = vshrl.u32 %v120_v34, 16  ;;  %v125_v49 = vshll.u32 %v121_v36, 16  ;;  %v126_v53 = vshrl.u32 %v121_v36, 16 }
  0x36   :  { %v145_v54 = vshll.u32 %v142_v41, 16  ;;  %v146_v55 = vshrl.u32 %v142_v41, 16  ;;  %v147_v56 = vshll.u32 %v143_v43, 16  ;;  %v148_v58 = vshrl.u32 %v143_v43, 16 }
  0x37   :  { %vm127_vm6 = vc.u32 %v119_v33, %v123_v45  ;;  %v129_v57 = vadd.s32 %v123_v45, %v119_v33  ;;  %v255_v40 = vshrl.u32 %v667_v50, %v749_v11  ;;  %v257_v2 = vshll.u32 %v667_v50, %v743_v3 }
  0x38   :  { %v128_v62 = vsel %vm127_vm6, 1, %v670_v61  ;;  %vm149_vm7 = vc.u32 %v141_v39, %v145_v54  ;;  %v151_v63 = vadd.s32 %v145_v54, %v141_v39  ;;  %v253_v6 = vor.u32 %v252_v31, %v251_v30 }
  0x39   :  { %v130_v0 = vadd.s32 %v128_v62, %v122_v38  ;;  %vm131_vm8 = vc.u32 %v129_v57, %v125_v49  ;;  %v150_v1 = vsel %vm149_vm7, 1, %v670_v61  ;;  %v256_v9 = vor.u32 %v255_v40, %v254_v37 }
  0x3a   :  { %v132_v4 = vsel %vm131_vm8, 1, %v670_v61  ;;  %v152_v5 = vadd.s32 %v150_v1, %v144_v51  ;;  %vm153_vm9 = vc.u32 %v151_v63, %v147_v56  ;;  %v258_v10 = vshrl.u32 %v668_v52, %v749_v11 }
  0x3b   :  { %v134_v7 = vadd.s32 %v132_v4, %v130_v0  ;;  %v154_v8 = vsel %vm153_vm9, 1, %v670_v61  ;;  %v260_v14 = vshll.u32 %v668_v52, %v743_v3  ;;  %v261_v15 = vshrl.u32 %v669_v59, %v749_v11 }
  0x3c   :  { %v156_v13 = vadd.s32 %v154_v8, %v152_v5  ;;  %vm263_vm10 = vcmp.lt.s32.totalorder %v759_v22, 1  ;;  %v790_v20 = vadd.s32 %v151_v63, %v147_v56  ;;  %v259_v23 = vor.u32 %v258_v10, %v257_v2 }
  0x3d   :  { %v135_v19 = vadd.s32 %v134_v7, %v124_v47  ;;  %vm265_vm11 = vcmp.lt.s32.totalorder %v759_v22, 3  ;;  %v262_v26 = vor.u32 %v261_v15, %v260_v14  ;;  %vm264_vm12 = vcmp.lt.s32.totalorder %v759_v22, 2 }
  0x3e   :  { %v157_v25 = vadd.s32 %v156_v13, %v146_v55  ;;  %vm266_vm13 = vcmp.lt.s32.totalorder %v759_v22, 4  ;;  %v271_v3 = vsel %vm263_vm10, %v250_v60, %v253_v6  ;;  %v400_v29 = vshrl.u32 %v399_v42, 23 }
  0x3f   :  { %v795_v27 = vadd.s32 %v135_v19, %v126_v53  ;;  %v272_v28 = vsel %vm266_vm13, %v259_v23, 920167782  ;;  %v280_v33 = vand.u32 65535, %v752_v16  ;;  %v281_v34 = vshrl.u32 %v752_v16, 16 }
  0x40   :  { %v158_v30 = vadd.s32 %v157_v25, %v148_v58  ;;  %v273_v31 = vsel %vm265_vm11, %v256_v9, %v272_v28  ;;  %v159_v36 = vmul.u32 %v722_v32, %v755_v17  ;;  %v275_v42 = vsel %vm263_vm10, %v253_v6, %v256_v9 }
  0x41   :  { %vm161_vm14 = vc.u32 %v795_v27, %v790_v20  ;;  %v274_v37 = vsel %vm264_vm12, %v271_v3, %v273_v31  ;;  %v276_v39 = vsel %vm266_vm13, %v262_v26, 1326507024  ;;  %v247_v45 = vshrl.u32 %v664_v44, %v749_v11 }
  0x42   :  { %v162_v38 = vadd.s32 1, %v158_v30  ;;  %v304_v41 = vand.u32 65535, %v274_v37  ;;  %v305_v43 = vshrl.u32 %v274_v37, 16  ;;  %v268_v32 = vsel %vm266_vm13, %v256_v9, 2102212464 }
  0x43   :  { %v277_v17 = vsel %vm265_vm11, %v259_v23, %v276_v39  ;;  %v581_v62 = vadd.s32 4294967169, %v400_v29  ;;  %v267_v11 = vsel %vm263_vm10, %v247_v45, %v250_v60  ;;  %v269_v1 = vsel %vm265_vm11, %v253_v6, %v268_v32 }
  0x44   :  { %v163_v47 = vsel %vm161_vm14, %v162_v38, %v158_v30  ;;  %v278_v49 = vsel %vm264_vm12, %v275_v42, %v277_v17  ;;  %v306_v51 = vmul.u32 %v304_v41, %v280_v33  ;;  %v307_v53 = vmul.u32 %v305_v43, %v280_v33 }
  0x45   :  { %v164_v54 = vadd.s32 %v163_v47, %v159_v36  ;;  %v282_v55 = vand.u32 65535, %v278_v49  ;;  %v283_v56 = vshrl.u32 %v278_v49, 16  ;;  %v308_v57 = vmul.u32 %v304_v41, %v281_v34 }
  0x46   :  { %v310_v58 = vshll.u32 %v307_v53, 16  ;;  %v309_v4 = vmul.u32 %v305_v43, %v281_v34  ;;  %v406_v15 = vadd.s32 1, %v581_v62  ;;  %v311_v23 = vshrl.u32 %v307_v53, 16 }
  0x47   :  { %v165_v63 = vadd.s32 536870912, %v164_v54  ;;  %v284_v40 = vmul.u32 %v282_v55, %v280_v33  ;;  %v285_v0 = vmul.u32 %v283_v56, %v280_v33  ;;  %v286_v2 = vmul.u32 %v282_v55, %v281_v34 }
  0x48   :  { %v312_v5 = vshll.u32 %v308_v57, 16  ;;  %v287_v8 = vmul.u32 %v283_v56, %v281_v34  ;;  %vm314_vm15 = vc.u32 %v306_v51, %v310_v58  ;;  %v316_v14 = vadd.s32 %v310_v58, %v306_v51 }
  0x49   :  { %v829_v7 = vshrl.u32 %v165_v63, 30  ;;  %v288_v9 = vshll.u32 %v285_v0, 16  ;;  %v290_v10 = vshll.u32 %v286_v2, 16  ;;  %v315_v13 = vsel %vm314_vm15, 1, %v670_v61 }
  0x4a   :  { %v313_v25 = vshrl.u32 %v308_v57, 16  ;;  %v317_v26 = vadd.s32 %v315_v13, %v309_v4  ;;  %vm318_vm1 = vc.u32 %v316_v14, %v312_v5  ;;  %v289_v28 = vshrl.u32 %v285_v0, 16 }
  0x4b   :  { %v167_v60 = vshll.u32 %v829_v7, 30  ;;  %vm292_vm0 = vc.u32 %v284_v40, %v288_v9  ;;  %v294_v19 = vadd.s32 %v288_v9, %v284_v40  ;;  %v291_v30 = vshrl.u32 %v286_v2, 16 }
  0x4c   :  { %v293_v6 = vsel %vm292_vm0, 1, %v670_v61  ;;  %v319_v33 = vsel %vm318_vm1, 1, %v670_v61  ;;  %vm407_vm3 = vcmp.gt.s32.totalorder %v406_v15, 0  ;;  %v396_v42 = vand.u32 2147483647, %v726_v35 }
  0x4d   :  { %v168_v3 = vsub.s32 %v164_v54, %v167_v60  ;;  %v295_v29 = vadd.s32 %v293_v6, %v287_v8  ;;  %vm296_vm2 = vc.u32 %v294_v19, %v290_v10  ;;  %v321_v37 = vadd.s32 %v319_v33, %v317_v26 }
  0x4e   :  { %v297_v31 = vsel %vm296_vm2, 1, %v670_v61  ;;  %v408_v38 = vsel %vm407_vm3, %v406_v15, 0  ;;  %v837_v43 = vadd.s32 %v316_v14, %v312_v5  ;;  %v270_v17 = vsel %vm264_vm12, %v267_v11, %v269_v1 }
  0x4f   :  { %vm169_vm4 = vcmp.lt.s32.totalorder %v168_v3, 0  ;;  %v170_v34 = vsub.s32 0, %v168_v3  ;;  %v299_v36 = vadd.s32 %v297_v31, %v295_v29  ;;  %v322_v45 = vadd.s32 %v321_v37, %v311_v23 }
  0x50   :  { %v410_v47 = vand.u32 31, %v408_v38  ;;  %v403_v54 = vand.u32 8388607, %v396_v42  ;;  %v160_v56 = vadd.s32 %v790_v20, %v795_v27  ;;  %v324_v57 = vmul.u32 %v752_v16, %v270_v17 }
  0x51   :  { %v171_v39 = vsel %vm169_vm4, %v170_v34, %v168_v3  ;;  %v300_v41 = vadd.s32 %v299_v36, %v289_v28  ;;  %v323_v51 = vadd.s32 %v322_v45, %v313_v25  ;;  %v852_v58 = vshrl.u32 %v408_v38, 5 }
  0x52   :  { %v172_v32 = vclz %v171_v39  ;;  %v845_v55 = vsub.s32 32, %v410_v47  ;;  %v413_v62 = vshll.u32 %v664_v44, %v410_v47  ;;  %v416_v63 = vshll.u32 %v665_v46, %v410_v47 }
  0x53   :  { %v841_v49 = vadd.s32 %v300_v41, %v291_v30  ;;  %v327_v22 = vadd.s32 1, %v323_v51  ;;  %vm68_vm7 = vcmp.lt.s32.totalorder %v712_v12, 0  ;;  %v190_v2 = vsub.s32 4, %v829_v7 }
  0x54   :  { %v570_v53 = vadd.s32 4294967294, %v172_v32  ;;  %v414_v0 = vshrl.u32 %v665_v46, %v845_v55  ;;  %v417_v20 = vshrl.u32 %v666_v48, %v845_v55  ;;  %v404_v5 = vor.u32 8388608, %v403_v54 }
  0x55   :  { %vm326_vm5 = vc.u32 %v841_v49, %v837_v43  ;;  %v419_v8 = vshll.u32 %v666_v48, %v410_v47  ;;  %vm428_vm8 = vcmp.lt.s32.totalorder %v852_v58, 1  ;;  %v420_v15 = vshrl.u32 %v667_v50, %v845_v55 }
  0x56   :  { %vm571_vm6 = vcmp.lt.s32.totalorder %v570_v53, 0  ;;  %v328_v40 = vsel %vm326_vm5, %v327_v22, %v323_v51  ;;  %v863_v13 = vor.u32 %v414_v0, %v413_v62  ;;  %v866_v14 = vor.u32 %v417_v20, %v416_v63 }
  0x57   :  { %v175_v11 = vsel %vm571_vm6, 0, %v570_v53  ;;  %v329_v4 = vadd.s32 %v328_v40, %v324_v57  ;;  %v422_v60 = vshll.u32 %v667_v50, %v410_v47  ;;  %v423_v6 = vshrl.u32 %v668_v52, %v845_v55 }
  0x58   :  { %v176_v16 = vsub.s32 32, %v175_v11  ;;  %v177_v27 = vshll.u32 %v168_v3, %v175_v11  ;;  %v180_v1 = vsub.s32 4294967266, %v175_v11  ;;  %v425_v48 = vshll.u32 %v668_v52, %v410_v47 }
  0x59   :  { %v330_v46 = vadd.s32 536870912, %v329_v4  ;;  %v421_v26 = vor.u32 %v420_v15, %v419_v8  ;;  %v426_v3 = vshrl.u32 %v669_v59, %v845_v55  ;;  %vm430_vm9 = vcmp.lt.s32.totalorder %v852_v58, 3 }
  0x5a   :  { %v178_v9 = vshrl.u32 %v160_v56, %v176_v16  ;;  %v181_v10 = vadd.s32 127, %v180_v1  ;;  %v424_v30 = vor.u32 %v423_v6, %v422_v60  ;;  %vm431_vm10 = vcmp.lt.s32.totalorder %v852_v58, 4 }
  0x5b   :  { %v874_v25 = vshrl.u32 %v330_v46, 30  ;;  %vm882_vm11 = vcmp.le.f32.partialorder %v66_v18, 0.7853982  ;;  %v191_v52 = vsel %vm68_vm7, %v190_v2, %v829_v7  ;;  %v427_v59 = vor.u32 %v426_v3, %v425_v48 }
  0x5c   :  { %v179_v19 = vor.u32 %v178_v9, %v177_v27  ;;  %v182_v23 = vshll.u32 %v181_v10, 23  ;;  %v437_v34 = vsel %vm431_vm10, %v424_v30, 920167782  ;;  %v892_v36 = vshll.u32 %v404_v5, 8 }
  0x5d   :  { %v332_v31 = vshll.u32 %v874_v25, 30  ;;  %vm429_vm12 = vcmp.lt.s32.totalorder %v852_v58, 2  ;;  %v436_v18 = vsel %vm428_vm8, %v863_v13, %v866_v14  ;;  %v438_v7 = vsel %vm430_vm9, %v421_v26, %v437_v34 }
  0x5e   :  { %v183_v28 = vor.u32 4788187, %v182_v23  ;;  %v186_v29 = vcvt.s32.f32 %v179_v19  ;;  %v193_v39 = vsel %vm882_vm11, 0, %v191_v52  ;;  %v440_v45 = vsel %vm428_vm8, %v866_v14, %v421_v26 }
  0x5f   :  { %v894_v37 = vsub.s32 %v329_v4, %v332_v31  ;;  %v441_v32 = vsel %vm431_vm10, %v427_v59, 1326507024  ;;  %v439_v47 = vsel %vm429_vm12, %v436_v18, %v438_v7  ;;  %v445_v53 = vand.u32 65535, %v892_v36 }
  0x60   :  { %v184_v33 = vand.u32 2147483647, %v183_v28  ;;  %v442_v51 = vsel %vm430_vm9, %v424_v30, %v441_v32  ;;  %v446_v57 = vshrl.u32 %v892_v36, 16  ;;  %v469_v22 = vand.u32 65535, %v439_v47 }
  0x61   :  { %vm334_vm13 = vcmp.lt.s32.totalorder %v894_v37, 0  ;;  %v335_v41 = vsub.s32 0, %v894_v37  ;;  %v443_v56 = vsel %vm429_vm12, %v440_v45, %v442_v51  ;;  %v470_v20 = vshrl.u32 %v439_v47, 16 }
  0x62   :  { %v187_v38 = vmul.f32 %v186_v29, %v184_v33  ;;  %v447_v11 = vand.u32 65535, %v443_v56  ;;  %v448_v40 = vshrl.u32 %v443_v56, 16  ;;  %v325_v27 = vadd.s32 %v837_v43, %v841_v49 }
  0x63   :  { %v336_v54 = vsel %vm334_vm13, %v335_v41, %v894_v37  ;;  %v932_v4 = vand.u32 3, %v193_v39  ;;  %v412_v5 = vshrl.u32 %v664_v44, %v845_v55  ;;  %v433_v8 = vsel %vm431_vm10, %v421_v26, 2102212464 }
  0x64   :  { %v188_v17 = vxor.u32 2147483648, %v187_v38  ;;  %v337_v63 = vclz %v336_v54  ;;  %v450_v2 = vmul.u32 %v448_v40, %v445_v53  ;;  %v938_v9 = vmul.u32 %v447_v11, %v446_v57 }
  0x65   :  { %v471_v15 = vmul.u32 %v469_v22, %v445_v53  ;;  %v449_v19 = vmul.u32 %v447_v11, %v445_v53  ;;  %v940_v43 = vmul.u32 %v470_v20, %v445_v53  ;;  %vm215_vm15 = vcmp.eq.s32.totalorder %v932_v4, 2 }
  0x66   :  { %v189_v62 = vsel %vm68_vm7, %v188_v17, %v187_v38  ;;  %v576_v1 = vadd.s32 4294967294, %v337_v63  ;;  %v453_v23 = vshll.u32 %v450_v2, 16  ;;  %v452_v55 = vmul.u32 %v448_v40, %v446_v57 }
  0x67   :  { %v926_v0 = vsel %vm882_vm11, %v712_v12, %v189_v62  ;;  %v455_v26 = vshll.u32 %v938_v9, 16  ;;  %v473_v28 = vmul.u32 %v469_v22, %v446_v57  ;;  %v474_v52 = vmul.u32 %v470_v20, %v446_v57 }
  0x68   :  { %v194_v16 = vmul.f32 %v926_v0, %v926_v0  ;;  %vm577_vm14 = vcmp.lt.s32.totalorder %v576_v1, 0  ;;  %vm212_vm0 = vcmp.eq.s32.totalorder %v932_v4, 0  ;;  %vm457_vm1 = vc.u32 %v449_v19, %v453_v23 }
  0x69   :  { %v340_v60 = vsel %vm577_vm14, 0, %v576_v1  ;;  %v459_v59 = vadd.s32 %v453_v23, %v449_v19  ;;  %v475_v33 = vshll.u32 %v940_v43, 16  ;;  %vm211_vm2 = vcmp.lt.s32.totalorder %v932_v4, 2 }
  0x6a   :  { %v195_v10 = vmul.f32 -0.001358992, %v194_v16  ;;  %v202_v46 = vmul.f32 -0.00019511016, %v194_v16  ;;  %v341_v48 = vsub.s32 32, %v340_v60  ;;  %v342_v3 = vshll.u32 %v894_v37, %v340_v60 }
  0x6b   :  { %v345_v44 = vsub.s32 4294967266, %v340_v60  ;;  %vm233_vm3 = vcmp.lt.s32.totalorder %v716_v21, 0  ;;  %v458_v7 = vsel %vm457_vm1, 1, %v670_v61  ;;  %vm952_vm4 = vcmp.le.f32.partialorder %v231_v24, 0.7853982 }
  0x6c   :  { %v196_v49 = vadd.f32 0.041655596, %v195_v10  ;;  %v203_v6 = vadd.f32 0.008332121, %v202_v46  ;;  %v343_v50 = vshrl.u32 %v325_v27, %v341_v48  ;;  %v454_v41 = vshrl.u32 %v450_v2, 16 }
  0x6d   :  { %v346_v31 = vadd.s32 127, %v345_v44  ;;  %v460_v45 = vadd.s32 %v458_v7, %v452_v55  ;;  %vm461_vm5 = vc.u32 %v459_v59, %v455_v26  ;;  %v456_v47 = vshrl.u32 %v938_v9, 16 }
  0x6e   :  { %v197_v29 = vmul.f32 %v196_v49, %v194_v16  ;;  %v204_v30 = vmul.f32 %v203_v6, %v194_v16  ;;  %v344_v18 = vor.u32 %v343_v50, %v342_v3  ;;  %v462_v51 = vsel %vm461_vm5, 1, %v670_v61 }
  0x6f   :  { %v347_v39 = vshll.u32 %v346_v31, 23  ;;  %v464_v56 = vadd.s32 %v462_v51, %v460_v45  ;;  %v477_v57 = vshll.u32 %v473_v28, 16  ;;  %vm479_vm6 = vc.u32 %v471_v15, %v475_v33 }
  0x70   :  { %v198_v34 = vadd.f32 -0.4999988, %v197_v29  ;;  %v205_v37 = vadd.f32 -0.16666654, %v204_v30  ;;  %v351_v54 = vcvt.s32.f32 %v344_v18  ;;  %v481_v24 = vadd.s32 %v475_v33, %v471_v15 }
  0x71   :  { %v348_v53 = vor.u32 4788187, %v347_v39  ;;  %v465_v11 = vadd.s32 %v464_v56, %v454_v41  ;;  %v476_v40 = vshrl.u32 %v940_v43, 16  ;;  %v480_v20 = vsel %vm479_vm6, 1, %v670_v61 }
  0x72   :  { %v199_v32 = vmul.f32 %v198_v34, %v194_v16  ;;  %v206_v17 = vmul.f32 %v205_v37, %v194_v16  ;;  %v482_v1 = vadd.s32 %v480_v20, %v474_v52  ;;  %vm483_vm7 = vc.u32 %v481_v24, %v477_v57 }
  0x73   :  { %v349_v63 = vand.u32 2147483647, %v348_v53  ;;  %v432_v9 = vsel %vm428_vm8, %v412_v5, %v863_v13  ;;  %v434_v10 = vsel %vm430_vm9, %v866_v14, %v433_v8  ;;  %v484_v46 = vsel %vm483_vm7, 1, %v670_v61 }
  0x74   :  { %v200_v22 = vadd.f32 1.0, %v199_v32  ;;  %v207_v62 = vadd.f32 1.0, %v206_v17  ;;  %v478_v19 = vshrl.u32 %v473_v28, 16  ;;  %vm209_vm10 = vweird.f32 %v712_v12 }
  0x75   :  { %v352_v2 = vmul.f32 %v351_v54, %v349_v63  ;;  %v466_v43 = vadd.s32 %v465_v11, %v456_v47  ;;  %v485_v49 = vadd.s32 %v481_v24, %v477_v57  ;;  %v435_v5 = vsel %vm429_vm12, %v432_v9, %v434_v10 }
  0x76   :  { %v208_v16 = vmul.f32 %v207_v62, %v926_v0  ;;  %v216_v27 = vxor.u32 2147483648, %v200_v22  ;;  %v486_v0 = vadd.s32 %v484_v46, %v482_v1  ;;  %v355_v48 = vsub.s32 4, %v874_v25 }
  0x77   :  { %v353_v23 = vxor.u32 2147483648, %v352_v2  ;;  %v489_v58 = vmul.u32 %v892_v36, %v435_v5  ;;  %vm491_vm8 = vc.u32 %v466_v43, %v485_v49  ;;  %vm374_vm14 = vweird.f32 %v716_v21 }
  0x78   :  { %v213_v15 = vxor.u32 2147483648, %v208_v16  ;;  %v217_v60 = vsel %vm215_vm15, %v216_v27, %v208_v16  ;;  %v487_v14 = vadd.s32 %v486_v0, %v476_v40  ;;  %v356_v28 = vsel %vm233_vm3, %v355_v48, %v874_v25 }
  0x79   :  { %v354_v8 = vsel %vm233_vm3, %v353_v23, %v352_v2  ;;  %v358_v31 = vsel %vm952_vm4, 0, %v356_v28  ;;  %v490_v11 = vadd.s32 %v485_v49, %v466_v43  ;;  %vm993_vm1 = vcmp.le.f32.partialorder %v396_v42, 0.7853982 }
  0x7a   :  { %v214_v13 = vsel %vm212_vm0, %v200_v22, %v213_v15  ;;  %v357_v12 = vsel %vm952_vm4, %v716_v21, %v354_v8  ;;  %v488_v3 = vadd.s32 %v487_v14, %v478_v19  ;;  %v375_v7 = vand.u32 3, %v358_v31 }
  0x7b   :  { %v218_v61 = vsel %vm211_vm2, %v214_v13, %v217_v60  ;;  %v359_v44 = vmul.f32 %v357_v12, %v357_v12  ;;  %vm398_vm0 = vcmp.lt.s32.totalorder %v726_v35, 0  ;;  %vm539_vm5 = vweird.f32 %v726_v35 }
  0x7c   :  { %v219_v6 = vsel %vm209_vm10, nan, %v218_v61  ;;  %v492_v55 = vadd.s32 1, %v488_v3  ;;  %vm380_vm9 = vcmp.eq.s32.totalorder %v375_v7, 2  ;;  %vm377_vm12 = vcmp.eq.s32.totalorder %v375_v7, 0 }
  0x7d   :  { %220 = vst [vmem:[#allocation8] sm:$0x1] %v219_v6  ;;  %v360_v26 = vmul.f32 -0.001358992, %v359_v44  ;;  %v367_v4 = vmul.f32 -0.00019511016, %v359_v44 }
  0x7e   :  { %v493_v29 = vsel %vm491_vm8, %v492_v55, %v488_v3  ;;  %vm376_vm13 = vcmp.lt.s32.totalorder %v375_v7, 2 }
  0x7f   :  { %v361_v30 = vadd.f32 0.041655596, %v360_v26  ;;  %v368_v50 = vadd.f32 0.008332121, %v367_v4  ;;  %v494_v52 = vadd.s32 %v493_v29, %v489_v58 }
  0x81   :  { %v362_v59 = vmul.f32 %v361_v30, %v359_v44  ;;  %v369_v33 = vmul.f32 %v368_v50, %v359_v44  ;;  %v495_v34 = vadd.s32 536870912, %v494_v52 }
  0x83   :  { %v363_v37 = vadd.f32 -0.4999988, %v362_v59  ;;  %v370_v36 = vadd.f32 -0.16666654, %v369_v33  ;;  %v496_v18 = vshrl.u32 %v495_v34, 30 }
  0x85   :  { %v364_v39 = vmul.f32 %v363_v37, %v359_v44  ;;  %v371_v41 = vmul.f32 %v370_v36, %v359_v44  ;;  %v497_v45 = vshll.u32 %v496_v18, 30  ;;  %v520_v43 = vsub.s32 4, %v496_v18 }
  0x87   :  { %v365_v32 = vadd.f32 1.0, %v364_v39  ;;  %v372_v17 = vadd.f32 1.0, %v371_v41  ;;  %v498_v25 = vsub.s32 %v494_v52, %v497_v45  ;;  %v521_v61 = vsel %vm398_vm0, %v520_v43, %v496_v18 }
  0x88   :  { %v523_v48 = vsel %vm993_vm1, 0, %v521_v61 }
  0x89   :  { %v373_v47 = vmul.f32 %v372_v17, %v357_v12  ;;  %v381_v51 = vxor.u32 2147483648, %v365_v32  ;;  %vm499_vm11 = vcmp.lt.s32.totalorder %v498_v25, 0  ;;  %v500_v53 = vsub.s32 0, %v498_v25 }
  0x8a   :  { %v540_v58 = vand.u32 3, %v523_v48 }
  0x8b   :  { %v378_v38 = vxor.u32 2147483648, %v373_v47  ;;  %v382_v54 = vsel %vm380_vm9, %v381_v51, %v373_v47  ;;  %v501_v56 = vsel %vm499_vm11, %v500_v53, %v498_v25 }
  0x8c   :  { %v502_v57 = vclz %v501_v56  ;;  %vm545_vm2 = vcmp.eq.s32.totalorder %v540_v58, 2  ;;  %vm542_vm3 = vcmp.eq.s32.totalorder %v540_v58, 0  ;;  %vm541_vm4 = vcmp.lt.s32.totalorder %v540_v58, 2 }
  0x8d   :  { %v379_v22 = vsel %vm377_vm12, %v365_v32, %v378_v38 }
  0x8e   :  { %v383_v62 = vsel %vm376_vm13, %v379_v22, %v382_v54  ;;  %v582_v24 = vadd.s32 4294967294, %v502_v57 }
  0x8f   :  { %v384_v63 = vsel %vm374_vm14, nan, %v383_v62 }
  0x90   :  { %385 = vst [vmem:[#allocation8 + $0x1] sm:$0x1] %v384_v63  ;;  %vm583_vm15 = vcmp.lt.s32.totalorder %v582_v24, 0 }
  0x91   :  { %v505_v40 = vsel %vm583_vm15, 0, %v582_v24 }
  0x92   :  { %v506_v20 = vsub.s32 32, %v505_v40  ;;  %v507_v16 = vshll.u32 %v498_v25, %v505_v40  ;;  %v510_v27 = vsub.s32 4294967266, %v505_v40 }
  0x94   :  { %v508_v1 = vshrl.u32 %v490_v11, %v506_v20  ;;  %v511_v2 = vadd.s32 127, %v510_v27 }
  0x96   :  { %v509_v9 = vor.u32 %v508_v1, %v507_v16  ;;  %v512_v10 = vshll.u32 %v511_v2, 23 }
  0x98   :  { %v513_v46 = vor.u32 4788187, %v512_v10  ;;  %v516_v15 = vcvt.s32.f32 %v509_v9 }
  0x9a   :  { %v514_v60 = vand.u32 2147483647, %v513_v46 }
  0x9c   :  { %v517_v21 = vmul.f32 %v516_v15, %v514_v60 }
  0x9e   :  { %v518_v0 = vxor.u32 2147483648, %v517_v21 }
  0xa0   :  { %v519_v23 = vsel %vm398_vm0, %v518_v0, %v517_v21 }
  0xa1   :  { %v522_v49 = vsel %vm993_vm1, %v726_v35, %v519_v23 }
  0xa2   :  { %v524_v13 = vmul.f32 %v522_v49, %v522_v49 }
  0xa4   :  { %v525_v5 = vmul.f32 -0.001358992, %v524_v13  ;;  %v532_v14 = vmul.f32 -0.00019511016, %v524_v13 }
  0xa6   :  { %v526_v8 = vadd.f32 0.041655596, %v525_v5  ;;  %v533_v6 = vadd.f32 0.008332121, %v532_v14 }
  0xa8   :  { %v527_v42 = vmul.f32 %v526_v8, %v524_v13  ;;  %v534_v12 = vmul.f32 %v533_v6, %v524_v13 }
  0xaa   :  { %v528_v3 = vadd.f32 -0.4999988, %v527_v42  ;;  %v535_v44 = vadd.f32 -0.16666654, %v534_v12 }
  0xac   :  { %v529_v55 = vmul.f32 %v528_v3, %v524_v13  ;;  %v536_v26 = vmul.f32 %v535_v44, %v524_v13 }
  0xae   :  { %v530_v4 = vadd.f32 1.0, %v529_v55  ;;  %v537_v28 = vadd.f32 1.0, %v536_v26 }
  0xb0   :  { %v538_v29 = vmul.f32 %v537_v28, %v522_v49  ;;  %v546_v30 = vxor.u32 2147483648, %v530_v4 }
  0xb2   :  { %v543_v50 = vxor.u32 2147483648, %v538_v29  ;;  %v547_v52 = vsel %vm545_vm2, %v546_v30, %v538_v29 }
  0xb4   :  { %v544_v31 = vsel %vm542_vm3, %v530_v4, %v543_v50 }
  0xb5   :  { %v548_v59 = vsel %vm541_vm4, %v544_v31, %v547_v52 }
  0xb6   :  { %v549_v33 = vsel %vm539_vm5, nan, %v548_v59 }
  0xb7   :  { %550 = vst [vmem:[#allocation8 + $0x2] sm:$0x1] %v549_v33 }
  0xb8   :  { %561 = dma.vmem_to_hbm [thread:$0]  %s557_s11, 64, %s559_s14, [#allocation3]  }
  0xb9   :  { %659 = dma.done.wait [#allocation3], 64  }
  0xba   :  { %660 = vsyncadd [#allocation3], 4294967232 }
  0xbb   :  { %566 = vsyncpa [#allocation3], 1 }
  0xbc   :  { %567 = vsyncpa [#allocation4], 1 }
  0xbd   :  { %568 = vsyncpa [#allocation6], 1 }

</bundles_post_ra>
